<compile_context>
chip_gen: v7x
topology: tpu7x:2x2x1
jax: 0.10.0
libtpu: 0.0.40
codegen_flags: <defaults>
</compile_context>

<pallas_src>
import functools
import math

import numpy as np
import jax
import jax.numpy as jnp
from jax import lax
from jax.experimental import pallas as pl
from jax.experimental.pallas import tpu as pltpu


def _round_up(x, m):
    return ((x + m - 1) // m) * m


def _vmem_capacity_bytes():
    """Physical VMEM capacity (v5e/v6e: 128 MiB, v7x: 64 MiB); conservative fallback."""
    try:
        info = pltpu.get_tpu_info()
        cap = getattr(info, "vmem_capacity_bytes", None)
        if cap:
            return int(cap)
    except Exception:
        pass
    return 64 * 1024 * 1024


def _choose_tq(l_q, l_k, vmem_cap):
    """Generation-aware query tile: largest of (512, 256, 128) whose pass-2 working set
    (~out double-buffer + f32 temps) fits ~half of VMEM; small L_Q uses a single tile."""
    if l_q <= 128:
        return l_q
    budget = max(int(vmem_cap * 0.5), 8 << 20)
    for cand in (512, 256, 128):
        if cand <= l_q and 24 * cand * max(l_k, 128) <= budget:
            return cand
    return 128


# ---------------------------------------------------------------------------
# Pass 1: sparsity measure M  (S = Q K^T recomputed on the MXU, never stored)
# ---------------------------------------------------------------------------
def _sparsity_measure_kernel(q_ref, k_ref, c_ref, m_ref):
    qv = q_ref[...]                                                   # (TQ, D)   bf16
    kv = k_ref[...]                                                   # (L_K, D)  bf16
    # TODO(synk): verify with pl.lower_as_mlir that contracting on the last dims does not
    # insert an XLU relayout of K; if it does, pre-transpose K once in the wrapper.
    s = lax.dot_general(qv, kv, (((1,), (1,)), ((), ())),
                        preferred_element_type=jnp.float32)           # (TQ, L_K)
    cf = c_ref[...].astype(jnp.float32)                               # int8 sample counts
    # max over sampled keys (duplicates irrelevant); every real row has >=1 sample (U_part>=1).
    sampled_max = jnp.max(jnp.where(cf > 0.0, s, -jnp.inf), axis=-1, keepdims=True)
    # sum over samples (with multiplicity) = Q . (C @ K) -> pushed to the MXU instead of a
    # full-width VPU multiply + reduction.
    ksum = lax.dot_general(cf.astype(kv.dtype), kv, (((1,), (0,)), ((), ())),
                           preferred_element_type=jnp.float32)        # (TQ, D)
    sampled_sum = jnp.sum(qv.astype(jnp.float32) * ksum, axis=-1, keepdims=True)
    l_k = s.shape[-1]
    m_ref[...] = sampled_max - sampled_sum * (1.0 / float(l_k))


# ---------------------------------------------------------------------------
# Pass 2a: softmax over the u selected query rows only
# ---------------------------------------------------------------------------
def _topk_attn_kernel(qsel_ref, k_ref, midx_ref, o_ref, *, scale, mask_flag):
    s = lax.dot_general(qsel_ref[...], k_ref[...],
                        (((1,), (1,)), ((), ())),
                        preferred_element_type=jnp.float32)           # (u_pad, L_K)
    scores = s * scale
    if mask_flag:
        cols = lax.broadcasted_iota(jnp.int32, s.shape, 1)
        scores = jnp.where(cols > midx_ref[...], -jnp.inf, scores)    # triu(1) w.r.t. orig row
    mx = jnp.max(scores, axis=-1, keepdims=True)
    e = jnp.exp(scores - mx)
    denom = jnp.sum(e, axis=-1, keepdims=True)
    o_ref[...] = (e * pl.reciprocal(denom)).astype(o_ref.dtype)       # exact reciprocal


# ---------------------------------------------------------------------------
# Pass 2b: dense fill (analytic pattern) + one-hot scatter of the u rows
# ---------------------------------------------------------------------------
def _fill_scatter_kernel(atop_ref, midx_ref, o_ref, *, mask_flag):
    tq, l_k = o_ref.shape
    row0 = pl.program_id(2) * tq
    rows = lax.broadcasted_iota(jnp.int32, (tq, 1), 0) + row0         # (TQ, 1)

    # Analytic softmax of an all-zero row: exact, no exp / no approx reciprocal.
    if mask_flag:
        cols = lax.broadcasted_iota(jnp.int32, (tq, l_k), 1)
        inv = 1.0 / (rows.astype(jnp.float32) + 1.0)
        pattern = jnp.where(cols <= rows, inv, 0.0)
    else:
        pattern = jnp.full((tq, l_k), 1.0 / float(l_k), jnp.float32)

    # Vectorized row selection + scatter: one-hot (TQ, u_pad) matmul against the u_pad
    # precomputed attention rows (padded m_top entries are -1 and never match).
    onehot = (rows == midx_ref[...]).astype(jnp.float32)              # (TQ, u_pad)
    selected = jnp.max(onehot, axis=-1, keepdims=True)                # (TQ, 1)
    gathered = lax.dot_general(onehot, atop_ref[...],
                               (((1,), (0,)), ((), ())),
                               preferred_element_type=jnp.float32)    # (TQ, L_K)
    o_ref[...] = jnp.where(selected > 0.0, gathered, pattern).astype(o_ref.dtype)


# ---------------------------------------------------------------------------
# Wrapper
# ---------------------------------------------------------------------------
def padded_prob_attention(queries, keys, values, attn_mask=None, *,
                          mask_flag=True, factor=5, scale=None,
                          sample_key=None, compute_dtype=jnp.bfloat16,
                          out_dtype=jnp.float32):
    """JAX/Pallas equivalent of PaddedProbAttention.forward (returns attn)."""
    del values, attn_mask  # unused by the torch forward pass as well
    B, L_Q, H, D = queries.shape
    _, L_K, _, _ = keys.shape

    q = jnp.transpose(queries, (0, 2, 1, 3))                          # (B,H,L_Q,D)
    k = jnp.transpose(keys, (0, 2, 1, 3))                             # (B,H,L_K,D)

    U_part = min(int(factor * math.ceil(math.log(L_K))), L_K)
    u = min(int(factor * math.ceil(math.log(L_Q))), L_Q)

    if sample_key is None:
        sample_key = jax.random.PRNGKey(0)
    # torch.randint(L_K, (L_Q, sample_k)) equivalent (shared across B, H).
    index_sample = jax.random.randint(sample_key, (L_Q, U_part), 0, L_K)

    # --- generation-aware tiling ------------------------------------------------
    vmem_cap = _vmem_capacity_bytes()
    TQ = _choose_tq(L_Q, L_K, vmem_cap)
    L_Qp = _round_up(L_Q, TQ)
    nq = L_Qp // TQ
    vmem_limit = max(int(vmem_cap * 0.7), 16 << 20)
    cparams3 = pltpu.CompilerParams(
        dimension_semantics=("parallel", "parallel", "parallel"),
        vmem_limit_bytes=vmem_limit)
    cparams2 = pltpu.CompilerParams(
        dimension_semantics=("parallel", "parallel"),
        vmem_limit_bytes=vmem_limit)

    if L_Qp != L_Q:
        q = jnp.pad(q, ((0, 0), (0, 0), (0, L_Qp - L_Q), (0, 0)))
    q_bf = q.astype(compute_dtype)
    k_bf = k.astype(compute_dtype)

    # int8 count matrix: C[i, j] = #times key j was sampled for query i (padded rows all-zero
    # -> their M is -inf and they are never selected).
    C = (jnp.zeros((L_Qp, L_K), jnp.int32)
         .at[jnp.arange(L_Q)[:, None], index_sample].add(1)).astype(jnp.int8)

    # --- pass 1: sparsity measure (grid ordered so C is not re-fetched per head) --
    M = pl.pallas_call(
        _sparsity_measure_kernel,
        grid=(B, nq, H),
        in_specs=[
            pl.BlockSpec((None, None, TQ, D), lambda b, i, h: (b, h, i, 0)),
            pl.BlockSpec((None, None, L_K, D), lambda b, i, h: (b, h, 0, 0)),
            pl.BlockSpec((TQ, L_K), lambda b, i, h: (i, 0)),
        ],
        out_specs=pl.BlockSpec((None, None, TQ, 1), lambda b, i, h: (b, h, i, 0)),
        out_shape=jax.ShapeDtypeStruct((B, H, L_Qp, 1), jnp.float32),
        compiler_params=cparams3,
    )(q_bf, k_bf, C)

    # Top-u queries by sparsity measure; set-equivalent to torch.topk(sorted=False).
    # TODO(synk): top_k has no clean in-kernel Pallas equivalent; kept in JAX glue.
    _, m_top = jax.lax.top_k(M[:, :, :L_Q, 0], u)                     # (B, H, u) int32

    u_pad = _round_up(max(u, 8), 8)
    pad_n = u_pad - u
    m_top_g = jnp.pad(m_top, ((0, 0), (0, 0), (0, pad_n)))                       # valid idx 0 for padding
    m_top_m = jnp.pad(m_top, ((0, 0), (0, 0), (0, pad_n)), constant_values=-1)   # never matches

    # Gather of the selected Q rows (mirrors torch's Q_reduce fancy-indexing).
    idx_full = jnp.broadcast_to(m_top_g[..., None], (B, H, u_pad, D))
    q_sel = jnp.take_along_axis(q_bf, idx_full, axis=2)               # (B,H,u_pad,D)
    midx_col = m_top_g[..., None].astype(jnp.int32)                   # (B,H,u_pad,1)
    midx_row = m_top_m[:, :, None, :].astype(jnp.int32)               # (B,H,1,u_pad)

    scale_val = float(scale) if scale is not None else 1.0 / math.sqrt(D)

    # --- pass 2a: softmax on the u selected rows only -----------------------------
    attn_top = pl.pallas_call(
        functools.partial(_topk_attn_kernel, scale=scale_val, mask_flag=mask_flag),
        grid=(B, H),
        in_specs=[
            pl.BlockSpec((None, None, u_pad, D), lambda b, h: (b, h, 0, 0)),
            pl.BlockSpec((None, None, L_K, D), lambda b, h: (b, h, 0, 0)),
            pl.BlockSpec((None, None, u_pad, 1), lambda b, h: (b, h, 0, 0)),
        ],
        out_specs=pl.BlockSpec((None, None, u_pad, L_K), lambda b, h: (b, h, 0, 0)),
        out_shape=jax.ShapeDtypeStruct((B, H, u_pad, L_K), jnp.float32),
        compiler_params=cparams2,
    )(q_sel, k_bf, midx_col)

    # --- pass 2b: dense analytic fill + scatter of the u rows ----------------------
    attn_full = pl.pallas_call(
        functools.partial(_fill_scatter_kernel, mask_flag=mask_flag),
        grid=(B, H, nq),
        in_specs=[
            pl.BlockSpec((None, None, u_pad, L_K), lambda b, h, i: (b, h, 0, 0)),
            pl.BlockSpec((None, None, 1, u_pad), lambda b, h, i: (b, h, 0, 0)),
        ],
        out_specs=pl.BlockSpec((None, None, TQ, L_K), lambda b, h, i: (b, h, i, 0)),
        out_shape=jax.ShapeDtypeStruct((B, H, L_Qp, L_K), out_dtype),
        compiler_params=cparams3,
    )(attn_top, midx_row)

    if L_Qp != L_Q:
        attn_full = attn_full[:, :, :L_Q, :]
    return attn_full                                                   # (B, H, L_Q, L_K)


def _reference(queries, keys, index_sample, *, mask_flag=True, factor=5, scale=None):
    """Pure-JAX (f32) re-implementation of the torch forward, given the same sample indices."""
    B, L_Q, H, D = queries.shape
    L_K = keys.shape[1]
    q = jnp.transpose(queries, (0, 2, 1, 3))
    k = jnp.transpose(keys, (0, 2, 1, 3))
    S = jnp.einsum("bhqd,bhkd->bhqk", q, k)
    idx = jnp.broadcast_to(index_sample[None, None], (B, H) + index_sample.shape)
    qk_sample = jnp.take_along_axis(S, idx, axis=-1)
    M = qk_sample.max(-1) - qk_sample.sum(-1) / L_K
    u = min(int(factor * math.ceil(math.log(L_Q))), L_Q)
    _, m_top = jax.lax.top_k(M, u)
    sel = (jnp.arange(L_Q)[None, None, :, None] == m_top[:, :, None, :]).any(-1)
    sc = scale if scale is not None else 1.0 / math.sqrt(D)
    scores = jnp.where(sel[..., None], S * sc, 0.0)
    if mask_flag:
        tri = jnp.triu(jnp.ones((L_Q, L_K), dtype=bool), 1)
        scores = jnp.where(tri[None, None], -jnp.inf, scores)
    return jax.nn.softmax(scores, axis=-1)


if __name__ == "__main__":
    # Note: the torch module has no learnable parameters (dropout is defined in __init__
    # but never applied in forward), so nothing to initialize.
    B, L_Q, L_K, H, D = 2, 8, 8, 2, 32
    factor, mask_flag = 5, True

    root = jax.random.PRNGKey(0)
    kq, kk, kv, ks = jax.random.split(root, 4)
    queries = jax.random.normal(kq, (B, L_Q, H, D), dtype=jnp.float32)
    keys = jax.random.normal(kk, (B, L_K, H, D), dtype=jnp.float32)
    values = jax.random.normal(kv, (B, L_K, H, D), dtype=jnp.float32)

    attn = padded_prob_attention(queries, keys, values, None,
                                 mask_flag=mask_flag, factor=factor,
                                 scale=None, sample_key=ks)
    attn = jax.block_until_ready(attn)
    assert attn.shape == (B, H, L_Q, L_K)

    # Numeric cross-check vs a pure-f32 JAX reference using identical sample indices
    # (at this size u == L_Q, so the top-u selection is unambiguous).  Tolerance
    # accounts for bf16 MXU inputs.
    index_sample = jax.random.randint(
        ks, (L_Q, min(int(factor * math.ceil(math.log(L_K))), L_K)), 0, L_K)
    ref = _reference(queries, keys, index_sample,
                     mask_flag=mask_flag, factor=factor, scale=None)
    np.testing.assert_allclose(np.asarray(attn), np.asarray(ref),
                               rtol=5e-2, atol=2e-2)

    # Second (still small) shape exercising the tiled path with u < L_Q row selection.
    # Structural checks only (selection near-ties make elementwise comparison against an
    # f32 reference ill-conditioned): finiteness, exact rows-sum-to-one, and that no more
    # than u rows per (b, h) deviate from the analytic causal fill pattern.
    B2, L2 = 2, 256
    q2 = jax.random.normal(jax.random.PRNGKey(1), (B2, L2, H, D), jnp.float32)
    k2 = jax.random.normal(jax.random.PRNGKey(2), (B2, L2, H, D), jnp.float32)
    v2 = jax.random.normal(jax.random.PRNGKey(3), (B2, L2, H, D), jnp.float32)
    attn2 = padded_prob_attention(q2, k2, v2, None, mask_flag=True,
                                  factor=factor, scale=None,
                                  sample_key=jax.random.PRNGKey(4))
    attn2 = jax.block_until_ready(attn2)
    assert attn2.shape == (B2, H, L2, L2)
    a2 = np.asarray(attn2)
    assert np.isfinite(a2).all()
    np.testing.assert_allclose(a2.sum(-1), 1.0, rtol=0, atol=5e-3)
    u2 = min(int(factor * math.ceil(math.log(L2))), L2)
    rows_i = np.arange(L2)[:, None]
    cols_j = np.arange(L2)[None, :]
    analytic = np.where(cols_j <= rows_i, 1.0 / (rows_i + 1.0), 0.0).astype(np.float32)
    deviates = (np.abs(a2 - analytic[None, None]) > 1e-5).any(-1)     # (B,H,L_Q)
    assert int(deviates.sum(-1).max()) <= u2

    print("KERNEL_OK")
</pallas_src>

<mosaic_0001>
module attributes {stable_mosaic.version = 11 : i64} {
  func.func @_sparsity_measure_kernel(%arg0: i32, %arg1: i32, %arg2: i32, %arg3: memref<1x1x8x32xbf16, #tpu.memory_space<vmem>>, %arg4: memref<1x1x8x32xbf16, #tpu.memory_space<vmem>>, %arg5: memref<8x8xi8, #tpu.memory_space<vmem>>, %arg6: memref<1x1x8x1xf32, #tpu.memory_space<vmem>>) attributes {dimension_semantics = [#tpu.dimension_semantics<parallel>, #tpu.dimension_semantics<parallel>, #tpu.dimension_semantics<parallel>], iteration_bounds = array<i64: 2, 1, 2>, scalar_prefetch = 0 : i64, scratch_operands = 0 : i64, tpu.core_type = #tpu.core_type<tc>, window_params = [{transform_indices = @transform_0, window_bounds = array<i64: 1, 1, 8, 32>}, {transform_indices = @transform_1, window_bounds = array<i64: 1, 1, 8, 32>}, {transform_indices = @transform_2, window_bounds = array<i64: 8, 8>}, {transform_indices = @transform_3, window_bounds = array<i64: 1, 1, 8, 1>}]} {
    %c0 = arith.constant 0 : index
    %c0_0 = arith.constant 0 : index
    %c0_1 = arith.constant 0 : index
    %c0_2 = arith.constant 0 : index
    %0 = vector.load %arg3[%c0, %c0_0, %c0_1, %c0_2] : memref<1x1x8x32xbf16, #tpu.memory_space<vmem>>, vector<1x1x8x32xbf16>
    %1 = vector.shape_cast %0 : vector<1x1x8x32xbf16> to vector<8x32xbf16>
    %c0_3 = arith.constant 0 : index
    %c0_4 = arith.constant 0 : index
    %c0_5 = arith.constant 0 : index
    %c0_6 = arith.constant 0 : index
    %2 = vector.load %arg4[%c0_3, %c0_4, %c0_5, %c0_6] : memref<1x1x8x32xbf16, #tpu.memory_space<vmem>>, vector<1x1x8x32xbf16>
    %3 = vector.shape_cast %2 : vector<1x1x8x32xbf16> to vector<8x32xbf16>
    %cst = arith.constant dense<0.000000e+00> : vector<8x8xf32>
    %4 = tpu.matmul %1, %3, %cst {dimension_numbers = #tpu.dot_dimension_numbers<[1], [1], [0], [0], [0, 0, 1, 0], [], []>} : vector<8x32xbf16>, vector<8x32xbf16>, vector<8x8xf32> -> vector<8x8xf32>
    %c0_7 = arith.constant 0 : index
    %c0_8 = arith.constant 0 : index
    %5 = vector.load %arg5[%c0_7, %c0_8] : memref<8x8xi8, #tpu.memory_space<vmem>>, vector<8x8xi8>
    %6 = arith.sitofp %5 : vector<8x8xi8> to vector<8x8xf32>
    %cst_9 = arith.constant 0.000000e+00 : f32
    %7 = vector.broadcast %cst_9 : f32 to vector<8x8xf32>
    %8 = arith.cmpf ogt, %6, %7 : vector<8x8xf32>
    %cst_10 = arith.constant 0xFF800000 : f32
    %9 = vector.broadcast %cst_10 : f32 to vector<8x8xf32>
    %10 = arith.select %8, %4, %9 : vector<8x8xi1>, vector<8x8xf32>
    %cst_11 = arith.constant dense<0xFF800000> : vector<8xf32>
    %11 = vector.multi_reduction <maximumf>, %10, %cst_11 [1] : vector<8x8xf32> to vector<8xf32>
    %12 = vector.shape_cast %11 : vector<8xf32> to vector<8x1xf32>
    %13 = arith.truncf %6 : vector<8x8xf32> to vector<8x8xbf16>
    %cst_12 = arith.constant dense<0.000000e+00> : vector<8x32xf32>
    %14 = tpu.matmul %13, %3, %cst_12 {dimension_numbers = #tpu.dot_dimension_numbers<[1], [0], [0], [1], [0, 0, 1, 1], [], []>} : vector<8x8xbf16>, vector<8x32xbf16>, vector<8x32xf32> -> vector<8x32xf32>
    %15 = arith.extf %1 : vector<8x32xbf16> to vector<8x32xf32>
    %16 = arith.mulf %15, %14 : vector<8x32xf32>
    %cst_13 = arith.constant dense<0.000000e+00> : vector<8xf32>
    %17 = vector.multi_reduction <add>, %16, %cst_13 [1] : vector<8x32xf32> to vector<8xf32>
    %18 = vector.shape_cast %17 : vector<8xf32> to vector<8x1xf32>
    %cst_14 = arith.constant 1.250000e-01 : f32
    %19 = vector.broadcast %cst_14 : f32 to vector<8x1xf32>
    %20 = arith.mulf %18, %19 : vector<8x1xf32>
    %21 = arith.subf %12, %20 : vector<8x1xf32>
    %c0_15 = arith.constant 0 : index
    %c0_16 = arith.constant 0 : index
    %c0_17 = arith.constant 0 : index
    %c0_18 = arith.constant 0 : index
    %22 = vector.load %arg6[%c0_15, %c0_16, %c0_17, %c0_18] : memref<1x1x8x1xf32, #tpu.memory_space<vmem>>, vector<1x1x8x1xf32>
    %23 = vector.shape_cast %22 : vector<1x1x8x1xf32> to vector<8x1xf32>
    %24 = vector.shape_cast %21 : vector<8x1xf32> to vector<1x1x8x1xf32>
    tpu.vector_store %arg6[%c0_15, %c0_16, %c0_17, %c0_18], %24 {strides = array<i32>} : memref<1x1x8x1xf32, #tpu.memory_space<vmem>>, vector<1x1x8x1xf32>,
    return
  }
  func.func @transform_0(%arg0: i32, %arg1: i32, %arg2: i32) -> (i32, i32, i32, i32) {
    %c0_i32 = arith.constant 0 : i32
    %c0_i32_0 = arith.constant 0 : i32
    return %arg0, %arg2, %arg1, %c0_i32 : i32, i32, i32, i32
  }
  func.func @transform_1(%arg0: i32, %arg1: i32, %arg2: i32) -> (i32, i32, i32, i32) {
    %c0_i32 = arith.constant 0 : i32
    %c0_i32_0 = arith.constant 0 : i32
    %c0_i32_1 = arith.constant 0 : i32
    return %arg0, %arg2, %c0_i32, %c0_i32_0 : i32, i32, i32, i32
  }
  func.func @transform_2(%arg0: i32, %arg1: i32, %arg2: i32) -> (i32, i32) {
    %c0_i32 = arith.constant 0 : i32
    %c0_i32_0 = arith.constant 0 : i32
    return %arg1, %c0_i32 : i32, i32
  }
  func.func @transform_3(%arg0: i32, %arg1: i32, %arg2: i32) -> (i32, i32, i32, i32) {
    %c0_i32 = arith.constant 0 : i32
    %c0_i32_0 = arith.constant 0 : i32
    return %arg0, %arg2, %arg1, %c0_i32 : i32, i32, i32, i32
  }
}

</mosaic_0001>

<bundles_post_ra>
// kernel: tpu_custom_call.1
= control target key start
LH: loop header
LB: loop body
LE: loop exit
PB: predicated region body
PF: predicated region fallthrough
CT: control target
= control target key end

     0   :  { %8 = vsyncpa [#allocation3], 0  ;;  %s1031_s0 = inlined_call_operand.hbm [shape: bf16[2,2,8,32], index: 0, kind: input, shape index: {}]   ;;  %s1032_s1 = inlined_call_operand.hbm [shape: bf16[2,2,8,32], index: 1, kind: input, shape index: {}]   ;;  %s1033_s2 = inlined_call_operand.vmem [shape: s8[8,8], index: 2, kind: input, shape index: {}]   ;;  %s1034_s3 = inlined_call_operand.vmem [shape: f32[2,2,8,1], index: 3, kind: output, shape index: {}]  }
   0x1   :  { %10 = vsyncpa [#allocation3 + $0x1], 0 }
   0x2   :  { %11 = vsyncpa [#allocation5], 0 }
   0x3   :  { %13 = vsyncpa [#allocation5 + $0x1], 0  ;;  %s821_s12 = smov 0   ;;  %s823_s13 = smov 0  }
   0x4   :  { %s825_s14 = smov 0   ;;  %s827_s15 = smov 0  }
   0x5   :  { %s829_s16 = smov 0   ;;  %s831_s17 = smov 0  }
   0x6   :  { %s833_s18 = smov 0   ;;  %s835_s19 = smov 0  }
   0x7 LB: > { %s551_s20 = sadd.s32 4294967295, %s795_s19   ;;  %s31_s21 = sadd.s32 1, %s787_s17  ;;  %s795_s19 = sphi %s835_s19, %s19_s19   ;;  %s791_s18 = sphi %s833_s18, %s1050_s18   ;;  %s787_s17 = sphi %s831_s17, %s1049_s17   ;;  %s783_s16 = sphi %s829_s16, %s1048_s16   ;;  %s779_s15 = sphi %s827_s15, %s1047_s15   ;;  %s775_s14 = sphi %s825_s14, %s1046_s14   ;;  %s771_s13 = sphi %s823_s13, %s1045_s13   ;;  %s767_s12 = sphi %s821_s12, %s1044_s12  }
   0x8   : > { %p32_p0 = scmp.ge.s32.totalorder %s31_s21, 2  ;;  %s38_s22 = sadd.s32 1, %s791_s18 }
   0x9   : > { %s49_s23 = sadd.s32 1, %s775_s14  ;;  %p56_p1 = scmp.ne.s32.totalorder %s775_s14, %s771_s13 }
   0xa   : > { %s1052_s21 = smov (%p32_p0, %s31_s21), 0  ;;  %s1054_s22 = smov (!%p32_p0, %s38_s22), %s791_s18 }
   0xb   : > { %s43_s24 = ssub.s32 %s787_s17, %s1052_s21  ;;  %p57_p2 = scmp.eq.s32.totalorder %s795_s19, 0 }
   0xc   : > { %p40_p3 = scmp.ge.s32.totalorder %s1054_s22, 2  ;;  %p62_p4 = scmp.ne.s32.totalorder %s771_s13, %s767_s12 }
   0xd   : > { %p872_p5 = por %p57_p2, %p56_p1  ;;  %p63_p6 = scmp.eq.s32.totalorder %s551_s20, 0 }
   0xe   : > { %s1056_s22 = smov (%p40_p3, %s1054_s22), 0  ;;  %p598_p8 = scmp.lt.s32.totalorder %s795_s19, 4 }
   0xf   : > { %p878_p7 = por %p63_p6, %p62_p4  ;;  %s42_s27 = ssub.s32 %s791_s18, %s1056_s22 }
  0x10   : > { %s44_s28 = sor.u32 %s43_s24, %s42_s27  ;;  %s886_s29 = sand.u32 1, %s775_s14  }
  0x11   : > { %s1037_s26 = scalar_select %p878_p7, 1, 0 }
  0x12   : > { %p47_p9 = scmp.eq.s32.totalorder %s44_s28, 0  ;;  %s556_s30 = sshll.u32 %s886_s29, 2 }
  0x13   : > { %s557_s4 = sshll.u32 %s791_s18, 1  ;;  %s181_s8 = scalar_lea.vmem [#allocation2], %s556_s30 }
  0x14   : > { %s891_s5 = scalar_select %p47_p9, %s775_s14, %s49_s23  }
  0x15   : > { %s894_s6 = sadd.s32 %s787_s17, %s557_s4  ;;  %s191_s9 = sshll.u32 %s181_s8, 4  ;;  %s906_s9 = int_to_ptr.vmem [resolvable:$true] %s191_s9 }
  0x16   : > { %s558_s7 = sshll.u32 %s894_s6, 6  ;;  %p912_p10 = pnand %p598_p8, %p872_p5 }
  0x17   : > { %s904_s12 = scalar_lea.hbm %s1031_s0, %s558_s7  ;;  %s178_s23 = scalar_lea.sflag [#allocation3], %s886_s29 }
  0x18   : > { %s665_s24 = scalar_lea.hbm %s904_s12, 64  ;;  %p667_p0 = pneg %p912_p10 }
  0x19   : > { %p666_p13 = scmp.ne.s32.totalorder %s904_s12, %s665_s24  ;;  %s670_s28 = scalar_lea.hbm %s1031_s0, 256 }
  0x1a   : > { %p671_p3 = scmp.lt.u32.totalorder %s904_s12, %s1031_s0  ;;  %p672_p4 = scmp.lt.u32.totalorder %s670_s28, %s665_s24 }
  0x1b   : > { %p668_p1 = pnand %p667_p0, %p666_p13  ;;  %p674_p6 = scmp.lt.u32.totalorder %s665_s24, %s904_s12 }
  0x1c   : > { %p673_p5 = por %p672_p4, %p671_p3 }
  0x1d   : > { %p669_p2 = pneg %p668_p1 }
  0x1e   : > { %p675_p8 = por %p674_p6, %p673_p5 }
  0x20   : > { %p676_p9 = pnand %p675_p8, %p669_p2 }
  0x22   : > { %679 = shalt.err (!%p676_p9)
}
  0x23   : > { %s680_s10 = scalar_lea.vmem %s906_s9, 64  ;;  %s797_s11 = smov [#allocation2]  }
  0x24   : > { %p681_p13 = scmp.ne.s32.totalorder %s906_s9, %s680_s10  ;;  %s685_s27 = sshll.u32 %s797_s11, 4  ;;  %s686_s27 = int_to_ptr.vmem [resolvable:$false] %s685_s27 }
  0x25   : > { %s687_s25 = scalar_lea.vmem %s686_s27, 128  ;;  %p688_p12 = scmp.lt.s32.totalorder %s906_s9, %s686_s27 }
  0x26   : > { %p683_p1 = pnand %p681_p13, %p667_p0  ;;  %p689_p3 = scmp.lt.s32.totalorder %s687_s25, %s680_s10 }
  0x28   : > { %p684_p11 = pneg %p683_p1  ;;  %p690_p4 = por %p689_p3, %p688_p12 }
  0x2a   : > { %p691_p5 = pnand %p690_p4, %p684_p11 }
  0x2c   : > { %694 = shalt.err (!%p691_p5)
}
  0x2d   : > { %594 = dma.hbm_to_vmem [thread:$0]  (!%p912_p10), %s904_s12, 64, %s906_s9, %s178_s23  }
  0x2e   : > { %p1039_p2 = scmp.lt.s32.totalorder %s795_s19, 5  ;;  %p1040_p6 = scmp.ge.s32.totalorder %s795_s19, 1 }
  0x2f   : > { %s957_s8 = scalar_lea.hbm %s1032_s1, %s558_s7  ;;  %s202_s10 = scalar_lea.vmem [#allocation4], %s556_s30 }
  0x30   : > { %p948_p8 = pnand %p1040_p6, %p1039_p2  ;;  %s211_s11 = sshll.u32 %s202_s10, 4  ;;  %s212_s11 = int_to_ptr.vmem [resolvable:$true] %s211_s11 }
  0x31   : > { %s199_s9 = scalar_lea.sflag [#allocation5], %s886_s29  ;;  %s695_s12 = scalar_lea.hbm %s957_s8, 64 }
  0x32   : > { %s1041_s24 = scalar_select %p948_p8, 1, 0 }
  0x33   : > { %p696_p11 = scmp.ne.s32.totalorder %s957_s8, %s695_s12  ;;  %s700_s7 = scalar_lea.hbm %s1032_s1, 256 }
  0x34   : > { %p701_p13 = scmp.lt.u32.totalorder %s957_s8, %s1032_s1  ;;  %p702_p1 = scmp.lt.u32.totalorder %s700_s7, %s695_s12 }
  0x35   : > { %p698_p12 = pnand %p696_p11, %p667_p0  ;;  %p704_p4 = scmp.lt.u32.totalorder %s695_s12, %s957_s8 }
  0x36   : > { %p703_p3 = por %p702_p1, %p701_p13 }
  0x37   : > { %p699_p9 = pneg %p698_p12 }
  0x38   : > { %p705_p5 = por %p704_p4, %p703_p3 }
  0x3a   : > { %p706_p2 = pnand %p705_p5, %p699_p9 }
  0x3c   : > { %709 = shalt.err (!%p706_p2)
}
  0x3d   : > { %s710_s29 = scalar_lea.vmem %s212_s11, 64  ;;  %s798_s30 = smov [#allocation4]  }
  0x3e   : > { %p711_p6 = scmp.ne.s32.totalorder %s212_s11, %s710_s29  ;;  %s715_s28 = sshll.u32 %s798_s30, 4  ;;  %s716_s28 = int_to_ptr.vmem [resolvable:$false] %s715_s28 }
  0x3f   : > { %s717_s4 = scalar_lea.vmem %s716_s28, 128  ;;  %p718_p7 = scmp.lt.s32.totalorder %s212_s11, %s716_s28 }
  0x40   : > { %p713_p11 = pnand %p711_p6, %p667_p0  ;;  %p719_p8 = scmp.lt.s32.totalorder %s717_s4, %s710_s29 }
  0x42   : > { %p714_p12 = pneg %p713_p11  ;;  %p720_p1 = por %p719_p8, %p718_p7 }
  0x44   : > { %p721_p13 = pnand %p720_p1, %p714_p12 }
  0x46   : > { %724 = shalt.err (!%p721_p13)
}
  0x47   : > { %597 = dma.hbm_to_vmem [thread:$0]  (!%p912_p10), %s957_s8, 64, %s212_s11, %s199_s9  }
  0x48   : > { %p1042_p9 = scmp.ne.s32.totalorder %s1041_s24, 0 }
  0x49   : > { %s222_s10 = sand.u32 (!%p1042_p9), 1, %s771_s13   ;;  %p1043_p0 = scmp.ne.s32.totalorder (!%p1042_p9), %s1037_s26, 0 }
  0x4a   : > { %220 = sbr.rel (%p1042_p9) target bundleno = 454 (0x1c6), region = 32  ;;  %s563_s12 = sshll.u32 (!%p1042_p9), %s222_s10, 2 }
  0x4b   : > { %s223_s6 = scalar_lea.sflag (!%p1042_p9), [#allocation3], %s222_s10  ;;  %s226_s23 = scalar_lea.vmem (!%p1042_p9), [#allocation2], %s563_s12 }
  0x51   : > { %758 = dma.done.wait (%p1043_p0), %s223_s6, 64  }
  0x52   : > { %760 = vsyncadd (%p1043_p0), %s223_s6, 4294967232  ;;  %s232_s7 = scalar_lea.sflag [#allocation5], %s222_s10  ;;  %s235_s27 = scalar_lea.vmem [#allocation4], %s563_s12 }
  0x53   : > { %762 = dma.done.wait (%p1043_p0), %s232_s7, 64  }
  0x54   : > { %764 = vsyncadd (%p1043_p0), %s232_s7, 4294967232  ;;  %v799_v0 = vmov 0.0   ;;  %vm800_vm0 = vmmov 0   ;;  %vm291_vm1 = vcmask 261120   ;;  %vm351_vm2 = vcmask 1043456   ;;  %p277_p7 = scmp.lt.s32.totalorder %s783_s16, 1 }
  0x55   : > { %575 = vmatprep.subr.bf16.mxu0 %v799_v0  ;;  %581 = vmatprep.subr.bf16.mxu1 %v799_v0  ;;  %v290_v1 = vld [vmem:[%s235_s27] sm:$0xf]  ;;  %v338_v2 = vld [vmem:[%s1033_s2] sm:$0x3]  ;;  %vm343_vm3 = vcmask 64512   ;;  %p279_p10 = scmp.lt.s32.totalorder %s779_s15, 1 }
  0x56   : > { %583 = vmatprep.mubr.msk.bf16.mxu1 %vm800_vm0, %v799_v0  ;;  %577 = vmatprep.mubr.msk.bf16.mxu0 %vm800_vm0, %v799_v0  ;;  %v296_v3 = vsel %vm291_vm1, %v290_v1, 0  ;;  %v352_v4 = vsel %vm351_vm2, %v290_v1, 0  ;;  %v347_v5 = vunpack.c.l.s8.bf16 %v338_v2  ;;  %v289_v6 = vld [vmem:[%s226_s23] sm:$0xf]  ;;  %v339_v7 = vunpack.c.0.s8 %v338_v2  ;;  %s1058_s16 = smov (!%p277_p7, %s783_s16), 1 }
  0x57   : > { %576 = vmatpush3.bf16.xpose.msra.mxu0 %v296_v3  ;;  %582 = vmatpush3.bf16.msra.mxu1 %v352_v4  ;;  %v394_v8 = vunpack.c.l.bf16 %v289_v6  ;;  %s1060_s15 = smov (!%p279_p10, %s779_s15), 1  ;;  %s565_s26 = sshll.u32 %s1058_s16, 1  ;;  %vm401_vm5 = vcmask 7168  }
  0x58   : > { %v340_v9 = vcvt.s32.f32 %v339_v7  ;;  %s285_s8 = sadd.s32 %s565_s26, %s1060_s15 }
  0x59   : > { %s566_s11 = sshll.u32 %s285_s8, 3 }
  0x5a   : > { %584 = vmatmul.mubr.msk.bf16.vlgmr.msra.gmra.mrb[0].mxu1 %vm343_vm3, %v347_v5  ;;  %vm341_vm4 = vcmp.gt.f32.partialorder %v340_v9, 0.0  ;;  %s287_s29 = scalar_lea.vmem %s1034_s3, %s566_s11 }
  0x5e   : > { %578 = vmatmul.mubr.msk.bf16.vlgmr.msra.gmra.mrb[0].mxu0 %vm291_vm1, %v289_v6 }
 0x12d   : > { %v388_v10 = vpop.f32.mrb[0].mxu1 }
 0x12e   : > { %v395_v11 = vmul.f32 %v394_v8, %v388_v10  ;;  %v585_v12 = vpop.f32.mrb[1].mxu1 }
 0x12f   : > { %v391_v13 = vpop.f32.mrb[2].mxu1 }
 0x130   : > { %v586_v14 = vpop.f32.mrb[3].mxu1  ;;  %v396_v15 = vsel %vm291_vm1, %v395_v11, 0.0 }
 0x131   : > { %397 = vadd.xlane.f32.xlu0 %v396_v15  ;;  %v332_v16 = vpop.f32.mrb[0].mxu0 }
 0x132   : > { %v342_v17 = vsel %vm341_vm4, %v332_v16, -inf  ;;  %v579_v18 = vpop.f32.mrb[1].mxu0 }
 0x133   : > { %v335_v19 = vpop.f32.mrb[2].mxu0  ;;  %v344_v20 = vsel %vm343_vm3, %v342_v17, -inf }
 0x134   : > { %v580_v21 = vpop.f32.mrb[3].mxu0 }
 0x135   : > { %345 = vmax.xlane.f32.xlu0 %v344_v20 }
 0x1be   : > { %v398_v22 = vpop.xlane.xlu0 %397 }
 0x1bf   : > { %v399_v23 = vmul.f32 0.125, %v398_v22 }
 0x1c2   : > { %v346_v24 = vpop.xlane.xlu0 %345 }
 0x1c3   : > { %v400_v25 = vsub.f32 %v346_v24, %v399_v23 }
 0x1c5   : > { %402 = vst.msk [vmem:[%s287_s29] sm:$0xff] %vm401_vm5, %v400_v25 }
 0x1c6 PF: > { %s19_s19 = sadd.s32 1, %s795_s19   ;;  %s1044_s12 = smov %s771_s13 }
 0x1c7   : > { %p16_p8 = scmp.ge.s32.totalorder %s19_s19, 6   ;;  %s1045_s13 = smov %s775_s14 }
 0x1c8   : > { %s1046_s14 = smov %s891_s5  ;;  %s1047_s15 = smov %s787_s17 }
 0x1c9   : > { %s1048_s16 = smov %s791_s18  ;;  %s1049_s17 = smov %s1052_s21 }
 0x1ca   : > { %s1050_s18 = smov %s1056_s22  ;;  %18 = sbr.rel (!%p16_p8) target bundleno = 7 (0x7), region = 88 }
 0x1d1   :  { %436 = vsyncpa [#allocation3], 1 }
 0x1d2   :  { %438 = vsyncpa [#allocation3 + $0x1], 1 }
 0x1d3   :  { %439 = vsyncpa [#allocation5], 1 }
 0x1d4   :  { %441 = vsyncpa [#allocation5 + $0x1], 1 }

</bundles_post_ra>
